<compile_context>
chip_gen: v5e
topology: v5e:2x2
jax: 0.10.0
libtpu: 0.0.40
codegen_flags: <defaults>
</compile_context>

<pallas_src>
import math

import numpy as np
import jax
import jax.numpy as jnp
from jax import lax
from jax.experimental import pallas as pl
from jax.experimental.pallas import tpu as pltpu


# -----------------------------------------------------------------------------
# IndexForNope (static mask builders, numpy)
# -----------------------------------------------------------------------------
def get_index_for_nope(rope_cfg, head_dim, head_num, layer_idx=0):
    version = rope_cfg["partial_rope_version"]
    if version == 0:
        mask = np.zeros(head_dim, dtype=bool)
    elif version == 1:
        keep = rope_cfg["top_k_rope_dim"]
        if keep <= 0:
            mask = np.ones(head_dim, dtype=bool)
        elif keep >= head_dim:
            mask = np.zeros(head_dim, dtype=bool)
        else:
            half = head_dim // 2
            m = np.ones(half, dtype=bool)
            m[:keep] = False
            mask = np.concatenate([m, m])
    elif version == 2:
        idx = np.arange(rope_cfg["uniform_start_point"], head_dim, rope_cfg["uniform_step"])
        mask = np.ones(head_dim, dtype=bool)
        mask[idx] = False
    elif version == 3:
        top_k, last_k = rope_cfg["top_k_rope_dim"], rope_cfg["last_k_rope_dim"]
        half = head_dim // 2
        m = np.zeros(half, dtype=bool)
        m[top_k: half - last_k] = True
        mask = np.concatenate([m, m])
    elif version == 5:
        last_k = rope_cfg["last_k_rope_dim"]
        half = head_dim // 2
        m = np.ones(half, dtype=bool)
        m[half - last_k:] = False
        mask = np.concatenate([m, m])
    else:
        # TODO(synk): partial_rope_version == 4 needs a qk_tensor checkpoint file (not synthetic).
        raise NotImplementedError("partial_rope_version 4 not supported in-script")
    return np.tile(mask, head_num)


# -----------------------------------------------------------------------------
# Tiled matmul kernel (projections / output projection)
# -----------------------------------------------------------------------------
_VMEM_LIMIT = 48 * 1024 * 1024   # explicit scoped-VMEM budget, leaves headroom on v7x (64 MiB)


def _pick_tile(dim, candidates):
    """Largest candidate that evenly divides dim; otherwise the full dim (always legal)."""
    for c in candidates:
        if dim >= c and dim % c == 0:
            return c
    return dim


def _matmul_kernel(x_ref, w_ref, o_ref, acc_ref):
    @pl.when(pl.program_id(2) == 0)
    def _():
        acc_ref[...] = jnp.zeros_like(acc_ref)

    acc_ref[...] += jnp.dot(x_ref[...], w_ref[...], preferred_element_type=jnp.float32)

    @pl.when(pl.program_id(2) == pl.num_programs(2) - 1)
    def _():
        o_ref[...] = acc_ref[...].astype(o_ref.dtype)


def matmul_pallas(x, w):
    """y = x @ w with (M, N, K) tiling, f32 accumulation, double-buffered HBM<->VMEM."""
    M, K = x.shape
    K2, N = w.shape
    assert K == K2
    tm = _pick_tile(M, (256, 128))
    tn = _pick_tile(N, (256, 128))
    tk = _pick_tile(K, (512, 256, 128))
    return pl.pallas_call(
        _matmul_kernel,
        out_shape=jax.ShapeDtypeStruct((M, N), x.dtype),
        grid=(M // tm, N // tn, K // tk),
        in_specs=[pl.BlockSpec((tm, tk), lambda i, j, k: (i, k)),
                  pl.BlockSpec((tk, tn), lambda i, j, k: (k, j))],
        out_specs=pl.BlockSpec((tm, tn), lambda i, j, k: (i, j)),
        scratch_shapes=[pltpu.VMEM((tm, tn), jnp.float32)],
        compiler_params=pltpu.CompilerParams(
            dimension_semantics=("parallel", "parallel", "arbitrary"),
            vmem_limit_bytes=_VMEM_LIMIT),
    )(x, w)


# -----------------------------------------------------------------------------
# Partial-RoPE application kernel (rotate_half with nope/scale folded into tables)
# -----------------------------------------------------------------------------
def _rope_apply_kernel(x_ref, cos_ref, sin_ref, o_ref):
    D = x_ref.shape[-1]
    half = D // 2
    x = x_ref[0]                              # (ts, D)
    c = cos_ref[...]
    s = sin_ref[...]
    x1, x2 = x[:, :half], x[:, half:]
    o_ref[0] = jnp.concatenate(
        [x1 * c[:, :half] - x2 * s[:, :half],
         x2 * c[:, half:] + x1 * s[:, half:]], axis=-1)


def apply_rope_pallas(x, cos, sin):
    """x: (G, S, D); cos/sin: (S, D) with nope dims folded (cos=1, sin=0) and any scale
    pre-multiplied.  Elementwise, pipelined over (G, S tiles)."""
    G, S, D = x.shape
    ts = _pick_tile(S, (512, 256, 128))
    return pl.pallas_call(
        _rope_apply_kernel,
        out_shape=jax.ShapeDtypeStruct((G, S, D), x.dtype),
        grid=(G, S // ts),
        in_specs=[pl.BlockSpec((1, ts, D), lambda g, si: (g, si, 0)),
                  pl.BlockSpec((ts, D), lambda g, si: (si, 0)),
                  pl.BlockSpec((ts, D), lambda g, si: (si, 0))],
        out_specs=pl.BlockSpec((1, ts, D), lambda g, si: (g, si, 0)),
        compiler_params=pltpu.CompilerParams(
            dimension_semantics=("parallel", "parallel"),
            vmem_limit_bytes=_VMEM_LIMIT),
    )(x, cos, sin)


# -----------------------------------------------------------------------------
# Flash-style MLA/GQA attention kernel (Q/K already rotated & scaled)
# -----------------------------------------------------------------------------
def _flash_mla_kernel(q_ref, k_ref, v_ref, o_ref, m_scr, l_scr, acc_scr):
    n_rep, tq, D = q_ref.shape[2], q_ref.shape[3], q_ref.shape[4]
    tk, Dv = k_ref.shape[2], v_ref.shape[3]
    R = n_rep * tq

    qi, ki = pl.program_id(2), pl.program_id(3)
    q_start = qi * tq
    k_start = ki * tk

    @pl.when(ki == 0)
    def _init():
        m_scr[...] = jnp.full(m_scr.shape, -jnp.inf, m_scr.dtype)
        l_scr[...] = jnp.zeros(l_scr.shape, l_scr.dtype)
        acc_scr[...] = jnp.zeros(acc_scr.shape, acc_scr.dtype)

    def _process(masked):
        q = q_ref[0, 0].reshape(R, D)                                      # (R, D)
        k = k_ref[0, 0]                                                    # (tk, D)
        # single full-D contraction on the MXU; softmax scale already folded into q
        scores = lax.dot_general(q, k, (((1,), (1,)), ((), ())),
                                 preferred_element_type=jnp.float32)       # (R, tk)
        if masked:  # only diagonal blocks pay for the iota mask
            qpos = q_start + (lax.broadcasted_iota(jnp.int32, (R, tk), 0) % tq)
            kpos = k_start + lax.broadcasted_iota(jnp.int32, (R, tk), 1)
            scores = jnp.where(kpos <= qpos, scores, -1e30)

        m_prev = m_scr[...]
        m_new = jnp.maximum(m_prev, jnp.max(scores, axis=-1, keepdims=True))
        alpha = jnp.exp(m_prev - m_new)
        p = jnp.exp(scores - m_new)
        l_scr[...] = alpha * l_scr[...] + jnp.sum(p, axis=-1, keepdims=True)
        v_blk = v_ref[0, 0]                                                # (tk, Dv)
        acc_scr[...] = alpha * acc_scr[...] + jnp.dot(
            p.astype(v_blk.dtype), v_blk, preferred_element_type=jnp.float32)
        m_scr[...] = m_new

    # Causal block pruning: blocks entirely above the diagonal are skipped.
    below = k_start + tk - 1 <= q_start                        # fully unmasked block
    diag = jnp.logical_and(k_start <= q_start + tq - 1,
                           k_start + tk - 1 > q_start)         # straddles the diagonal

    @pl.when(below)
    def _():
        _process(masked=False)

    @pl.when(diag)
    def _():
        _process(masked=True)

    @pl.when(ki == pl.num_programs(3) - 1)
    def _finalize():
        out = acc_scr[...] * pl.reciprocal(l_scr[...], approx=True)
        o_ref[0, 0] = out.reshape(n_rep, tq, Dv).astype(o_ref.dtype)


def flash_mla_attention(q, k, v):
    """q: (B, Hkv, n_rep, S, D) pre-rotated & pre-scaled; k: (B, Hkv, S, D) pre-rotated;
    v: (B, Hkv, S, Dv)."""
    B, Hkv, n_rep, S, D = q.shape
    Dv = v.shape[-1]
    tq = _pick_tile(S, (256, 128, 64, 32, 16, 8))
    tk = _pick_tile(S, (512, 256, 128, 64, 32, 16, 8))
    R = n_rep * tq
    return pl.pallas_call(
        _flash_mla_kernel,
        out_shape=jax.ShapeDtypeStruct((B, Hkv, n_rep, S, Dv), q.dtype),
        grid=(B, Hkv, S // tq, S // tk),
        in_specs=[
            pl.BlockSpec((1, 1, n_rep, tq, D), lambda b, h, qi, ki: (b, h, 0, qi, 0)),
            pl.BlockSpec((1, 1, tk, D), lambda b, h, qi, ki: (b, h, ki, 0)),
            pl.BlockSpec((1, 1, tk, Dv), lambda b, h, qi, ki: (b, h, ki, 0)),
        ],
        out_specs=pl.BlockSpec((1, 1, n_rep, tq, Dv),
                               lambda b, h, qi, ki: (b, h, 0, qi, 0)),
        scratch_shapes=[pltpu.VMEM((R, 1), jnp.float32),
                        pltpu.VMEM((R, 1), jnp.float32),
                        pltpu.VMEM((R, Dv), jnp.float32)],
        compiler_params=pltpu.CompilerParams(
            dimension_semantics=("parallel", "parallel", "parallel", "arbitrary"),
            vmem_limit_bytes=_VMEM_LIMIT),
    )(q, k, v)


# -----------------------------------------------------------------------------
# Module
# -----------------------------------------------------------------------------
def _init_w(key, fan_in, fan_out):
    return jax.random.normal(key, (fan_in, fan_out), jnp.float32) / np.sqrt(fan_in)


class CustomCausalSelfAttentionPallas:
    def __init__(self, config, layer_idx, key):
        self.n_q = config["num_attention_heads"]
        self.n_kv = config["num_key_value_heads"]
        assert self.n_q % self.n_kv == 0
        self.n_rep = self.n_q // self.n_kv
        self.d_model = config["hidden_size"]
        self.d_qk = self.d_model // self.n_q
        self.d_v = self.d_model // self.n_q
        self.rope_theta = config["rope_theta"]
        self.is_using_mup = config.get("is_using_mup", False)
        self.layer_idx = layer_idx
        self.low_rank = config["SVD"]["low_rank"]
        self.is_share_W_down = config["SVD"]["method"] not in (2, 3)

        self.nope_mask = get_index_for_nope(config["RoPE"], head_dim=self.d_qk,
                                            head_num=self.n_kv, layer_idx=layer_idx)
        self.rope_idx = np.where(~self.nope_mask)[0]
        self.nope_idx = np.where(self.nope_mask)[0]
        self.n_rope = int((~self.nope_mask).sum())
        self.n_nope = self.n_kv * self.d_qk - self.n_rope

        ks = jax.random.split(key, 7)
        self.Wq = _init_w(ks[0], self.d_model, self.n_q * self.d_qk)
        self.Wkr = _init_w(ks[1], self.d_model, self.n_rope)
        self.Wdk = _init_w(ks[2], self.d_model, self.low_rank * self.n_kv)
        self.Wdv = (None if self.is_share_W_down
                    else _init_w(ks[3], self.d_model, self.low_rank * self.n_kv))
        self.Wuk = _init_w(ks[4], self.low_rank * self.n_kv, self.n_nope)
        self.Wuv = _init_w(ks[5], self.low_rank * self.n_kv, self.n_kv * self.d_v)
        self.Wo = _init_w(ks[6], self.n_q * self.d_qk, self.d_model)

        # Fused projection weights: hidden_states is read once for all down projections.
        down = [self.Wq, self.Wkr, self.Wdk] + ([] if self.is_share_W_down else [self.Wdv])
        self.W_down_fused = jnp.concatenate(down, axis=1)
        self.W_up_fused = (jnp.concatenate([self.Wuk, self.Wuv], axis=1)
                           if self.is_share_W_down else None)

        # Static column permutation replacing the runtime scatter of
        # key[..., ~nope_mask] = k_rope ; key[..., nope_mask] = k_nope.
        perm = np.zeros(self.n_kv * self.d_qk, dtype=np.int32)
        perm[self.rope_idx] = np.arange(self.n_rope)
        perm[self.nope_idx] = self.n_rope + np.arange(self.n_nope)
        self.key_perm = jnp.asarray(perm)

        # Per-head nope pattern (identical across heads for partial_rope_version != 4).
        self.nope_head = np.asarray(self.nope_mask[: self.d_qk])
        self.softmax_scale = (1.0 / self.d_qk if self.is_using_mup
                              else 1.0 / math.sqrt(self.d_qk))

    # LlamaRotaryEmbedding(dim=d_qk, theta=rope_theta) tables with the nope mask and the
    # softmax scale (Q side) pre-folded, so the RoPE kernel is a plain rotate_half FMA.
    def _rope_tables(self, seq_len):
        # TODO(synk): flash_attn varlen handling of a padded sequence_mask is not reproduced;
        # positions assume an all-ones sequence_mask (pure causal attention).
        pos = jnp.arange(seq_len, dtype=jnp.float32)
        inv_freq = 1.0 / (self.rope_theta ** (
            jnp.arange(0, self.d_qk, 2, dtype=jnp.float32) / self.d_qk))
        freqs = pos[:, None] * inv_freq                       # (S, D/2)
        emb = jnp.concatenate([freqs, freqs], axis=-1)        # (S, D)
        nope = jnp.asarray(self.nope_head)
        cos = jnp.where(nope, 1.0, jnp.cos(emb)).astype(jnp.float32)
        sin = jnp.where(nope, 0.0, jnp.sin(emb)).astype(jnp.float32)
        s = jnp.float32(self.softmax_scale)
        return cos * s, sin * s, cos, sin                     # cos_q, sin_q, cos_k, sin_k

    def _project(self, hidden_states):
        S, B, _ = hidden_states.shape
        h2 = hidden_states.reshape(S * B, self.d_model)
        nq, nr, nd = self.n_q * self.d_qk, self.n_rope, self.low_rank * self.n_kv
        y = matmul_pallas(h2, self.W_down_fused)
        q, k_r = y[:, :nq], y[:, nq:nq + nr]
        if self.is_share_W_down:
            c_kv = y[:, nq + nr: nq + nr + nd]
            y2 = matmul_pallas(c_kv, self.W_up_fused)
            k_c, v = y2[:, :self.n_nope], y2[:, self.n_nope:]
        else:
            c_k = y[:, nq + nr: nq + nr + nd]
            c_v = y[:, nq + nr + nd:]
            k_c = matmul_pallas(c_k, self.Wuk)
            v = matmul_pallas(c_v, self.Wuv)
        # key[..., ~nope_mask] = k_r ; key[..., nope_mask] = k_c  (static permutation)
        key_flat = jnp.take(jnp.concatenate([k_r, k_c], axis=1), self.key_perm, axis=1)
        q5 = q.reshape(S, B, self.n_kv, self.n_rep, self.d_qk).transpose(1, 2, 3, 0, 4)
        k4 = key_flat.reshape(S, B, self.n_kv, self.d_qk).transpose(1, 2, 0, 3)
        v4 = v.reshape(S, B, self.n_kv, self.d_v).transpose(1, 2, 0, 3)
        return q5, k4, v4     # (B,Hkv,n_rep,S,D), (B,Hkv,S,D), (B,Hkv,S,Dv)

    def forward(self, hidden_states, sequence_mask):
        # TODO(synk): padded sequence_mask (flash_attn varlen unpad/pad) is not reproduced;
        # this path assumes an all-ones sequence_mask (pure causal attention).
        S, B, _ = hidden_states.shape
        q5, k4, v4 = self._project(hidden_states)
        cos_q, sin_q, cos_k, sin_k = self._rope_tables(S)
        # Pre-apply partial RoPE once per element (scale folded into the Q tables), so the
        # flash inner loop is pure MXU + online softmax.
        Hkv, n_rep, D, Dv = self.n_kv, self.n_rep, self.d_qk, self.d_v
        qr = apply_rope_pallas(q5.reshape(B * Hkv * n_rep, S, D), cos_q, sin_q)
        qr = qr.reshape(B, Hkv, n_rep, S, D)
        kr = apply_rope_pallas(k4.reshape(B * Hkv, S, D), cos_k, sin_k)
        kr = kr.reshape(B, Hkv, S, D)
        attn = flash_mla_attention(qr, kr, v4)
        attn_sb = attn.transpose(3, 0, 1, 2, 4).reshape(S * B, self.n_q * Dv)
        out = matmul_pallas(attn_sb, self.Wo).reshape(S, B, self.d_model)
        return {"hidden_states": out, "sequence_mask": sequence_mask}

    # Pure-JAX reference (independent of fused weights / folded tables / flash tiling).
    def reference(self, hidden_states, sequence_mask):
        S, B, _ = hidden_states.shape
        h2 = hidden_states.reshape(S * B, self.d_model)
        q = h2 @ self.Wq
        k_r = h2 @ self.Wkr
        if self.is_share_W_down:
            c_kv = h2 @ self.Wdk
            k_c, v = c_kv @ self.Wuk, c_kv @ self.Wuv
        else:
            k_c = (h2 @ self.Wdk) @ self.Wuk
            v = (h2 @ self.Wdv) @ self.Wuv
        key_flat = jnp.zeros((S * B, self.n_kv * self.d_qk), q.dtype)
        key_flat = key_flat.at[:, self.rope_idx].set(k_r)
        key_flat = key_flat.at[:, self.nope_idx].set(k_c)
        q4 = q.reshape(S, B, self.n_q, self.d_qk).transpose(1, 2, 0, 3)
        k4 = key_flat.reshape(S, B, self.n_kv, self.d_qk).transpose(1, 2, 0, 3)
        v4 = v.reshape(S, B, self.n_kv, self.d_v).transpose(1, 2, 0, 3)

        pos = jnp.arange(S, dtype=jnp.float32)
        inv_freq = 1.0 / (self.rope_theta ** (
            jnp.arange(0, self.d_qk, 2, dtype=jnp.float32) / self.d_qk))
        freqs = pos[:, None] * inv_freq
        emb = jnp.concatenate([freqs, freqs], axis=-1)
        cos, sin = jnp.cos(emb), jnp.sin(emb)
        nope = jnp.asarray(self.nope_head)
        half = self.d_qk // 2

        def rope(x):
            x1, x2 = x[..., :half], x[..., half:]
            rot = jnp.concatenate([x1 * cos[:, :half] - x2 * sin[:, :half],
                                   x2 * cos[:, half:] + x1 * sin[:, half:]], axis=-1)
            return jnp.where(nope, x, rot)

        qr = rope(q4)
        kr = jnp.repeat(rope(k4), self.n_rep, axis=1)
        vr = jnp.repeat(v4, self.n_rep, axis=1)
        scores = jnp.einsum("bhqd,bhkd->bhqk", qr, kr) * self.softmax_scale
        causal = jnp.tril(jnp.ones((S, S), bool))
        scores = jnp.where(causal, scores, -1e30)
        p = jax.nn.softmax(scores, axis=-1)
        attn = jnp.einsum("bhqk,bhkd->bhqd", p, vr)
        attn_sb = attn.transpose(2, 0, 1, 3).reshape(S * B, self.n_q * self.d_v)
        return (attn_sb @ self.Wo).reshape(S, B, self.d_model)


# -----------------------------------------------------------------------------
# Main
# -----------------------------------------------------------------------------
if __name__ == "__main__":
    config = dict(
        num_attention_heads=4,
        num_key_value_heads=2,          # GQA, n_repeats = 2
        hidden_size=32,                 # d_qk = d_v = 8
        max_position_embeddings=64,
        rope_theta=10000.0,
        is_using_mup=False,
        rope_interleaved=False,
        RoPE=dict(partial_rope_version=1, top_k_rope_dim=2),
        SVD=dict(method=7, low_rank=4),  # shared W_down
    )

    root = jax.random.PRNGKey(0)
    k_w, k_x = jax.random.split(root)
    module = CustomCausalSelfAttentionPallas(config, layer_idx=0, key=k_w)

    S, B = 8, 2
    hidden_states = jax.random.normal(k_x, (S, B, config["hidden_size"]), jnp.float32)
    sequence_mask = jnp.ones((B, S), dtype=jnp.bool_)

    out = module.forward(hidden_states, sequence_mask)
    jax.block_until_ready(out["hidden_states"])

    ref = module.reference(hidden_states, sequence_mask)
    np.testing.assert_allclose(np.asarray(out["hidden_states"]), np.asarray(ref),
                               rtol=2e-2, atol=2e-2)
    print("KERNEL_OK")
</pallas_src>

<mosaic_0001>
module attributes {stable_mosaic.version = 11 : i64} {
  func.func @_matmul_kernel(%arg0: i32, %arg1: i32, %arg2: i32, %arg3: memref<16x32xf32, #tpu.memory_space<vmem>>, %arg4: memref<32x48xf32, #tpu.memory_space<vmem>>, %arg5: memref<16x48xf32, #tpu.memory_space<vmem>>, %arg6: memref<16x48xf32, #tpu.memory_space<vmem>>) attributes {dimension_semantics = [#tpu.dimension_semantics<parallel>, #tpu.dimension_semantics<parallel>, #tpu.dimension_semantics<arbitrary>], iteration_bounds = array<i64: 1, 1, 1>, scalar_prefetch = 0 : i64, scratch_operands = 1 : i64, tpu.core_type = #tpu.core_type<tc>, window_params = [{transform_indices = @transform_0, window_bounds = array<i64: 16, 32>}, {transform_indices = @transform_1, window_bounds = array<i64: 32, 48>}, {transform_indices = @transform_2, window_bounds = array<i64: 16, 48>}]} {
    %c0_i32 = arith.constant 0 : i32
    %0 = arith.cmpi eq, %arg2, %c0_i32 : i32
    %1 = arith.extui %0 : i1 to i32
    %c0_i32_0 = arith.constant 0 : i32
    %2 = arith.cmpi ne, %1, %c0_i32_0 : i32
    scf.if %2 {
      %cst_10 = arith.constant 0.000000e+00 : f32
      %12 = vector.broadcast %cst_10 : f32 to vector<16x48xf32>
      %c0_11 = arith.constant 0 : index
      %c0_12 = arith.constant 0 : index
      %13 = vector.load %arg6[%c0_11, %c0_12] : memref<16x48xf32, #tpu.memory_space<vmem>>, vector<16x48xf32>
      tpu.vector_store %arg6[%c0_11, %c0_12], %12 {strides = array<i32>} : memref<16x48xf32, #tpu.memory_space<vmem>>, vector<16x48xf32>,
    } else {
    }
    %c0 = arith.constant 0 : index
    %c0_1 = arith.constant 0 : index
    %3 = vector.load %arg6[%c0, %c0_1] : memref<16x48xf32, #tpu.memory_space<vmem>>, vector<16x48xf32>
    %c0_2 = arith.constant 0 : index
    %c0_3 = arith.constant 0 : index
    %4 = vector.load %arg3[%c0_2, %c0_3] : memref<16x32xf32, #tpu.memory_space<vmem>>, vector<16x32xf32>
    %c0_4 = arith.constant 0 : index
    %c0_5 = arith.constant 0 : index
    %5 = vector.load %arg4[%c0_4, %c0_5] : memref<32x48xf32, #tpu.memory_space<vmem>>, vector<32x48xf32>
    %cst = arith.constant dense<0.000000e+00> : vector<16x48xf32>
    %6 = tpu.matmul %4, %5, %cst {dimension_numbers = #tpu.dot_dimension_numbers<[1], [0], [0], [1], [0, 0, 1, 1], [], []>} : vector<16x32xf32>, vector<32x48xf32>, vector<16x48xf32> -> vector<16x48xf32>
    %7 = arith.addf %3, %6 : vector<16x48xf32>
    %c0_6 = arith.constant 0 : index
    %c0_7 = arith.constant 0 : index
    %8 = vector.load %arg6[%c0_6, %c0_7] : memref<16x48xf32, #tpu.memory_space<vmem>>, vector<16x48xf32>
    tpu.vector_store %arg6[%c0_6, %c0_7], %7 {strides = array<i32>} : memref<16x48xf32, #tpu.memory_space<vmem>>, vector<16x48xf32>,
    %c0_i32_8 = arith.constant 0 : i32
    %9 = arith.cmpi eq, %arg2, %c0_i32_8 : i32
    %10 = arith.extui %9 : i1 to i32
    %c0_i32_9 = arith.constant 0 : i32
    %11 = arith.cmpi ne, %10, %c0_i32_9 : i32
    scf.if %11 {
      %c0_10 = arith.constant 0 : index
      %c0_11 = arith.constant 0 : index
      %12 = vector.load %arg6[%c0_10, %c0_11] : memref<16x48xf32, #tpu.memory_space<vmem>>, vector<16x48xf32>
      %c0_12 = arith.constant 0 : index
      %c0_13 = arith.constant 0 : index
      %13 = vector.load %arg5[%c0_12, %c0_13] : memref<16x48xf32, #tpu.memory_space<vmem>>, vector<16x48xf32>
      tpu.vector_store %arg5[%c0_12, %c0_13], %12 {strides = array<i32>} : memref<16x48xf32, #tpu.memory_space<vmem>>, vector<16x48xf32>,
    } else {
    }
    return
  }
  func.func @transform_0(%arg0: i32, %arg1: i32, %arg2: i32) -> (i32, i32) {
    %c0_i32 = arith.constant 0 : i32
    return %arg0, %arg2 : i32, i32
  }
  func.func @transform_1(%arg0: i32, %arg1: i32, %arg2: i32) -> (i32, i32) {
    %c0_i32 = arith.constant 0 : i32
    return %arg2, %arg1 : i32, i32
  }
  func.func @transform_2(%arg0: i32, %arg1: i32, %arg2: i32) -> (i32, i32) {
    %c0_i32 = arith.constant 0 : i32
    return %arg0, %arg1 : i32, i32
  }
}

</mosaic_0001>

<bundles_post_ra>
// kernel: tpu_custom_call.1
= control target key start
LH: loop header
LB: loop body
LE: loop exit
PB: predicated region body
PF: predicated region fallthrough
CT: control target
= control target key end

     0   :  { %7 = vsyncpa [#allocation4], 0  ;;  %s256_s0 = inlined_call_operand.hbm [shape: f32[16,32], index: 0, kind: input, shape index: {}]   ;;  %s257_s1 = inlined_call_operand.hbm [shape: f32[32,48], index: 1, kind: input, shape index: {}]   ;;  %s258_s2 = inlined_call_operand.hbm [shape: f32[16,48], index: 2, kind: output, shape index: {}]  }
   0x1   :  { %8 = vsyncpa [#allocation7], 0 }
   0x2   :  { %9 = vsyncpa [#allocation5], 0  ;;  %s14_s11 = sshll.u32 %s256_s0, 4  ;;  %s211_s12 = smov [#allocation3]   ;;  %s15_s11 = int_to_ptr.hbm [resolvable:$true] %s14_s11 }
   0x3   :  { %s16_s13 = sshll.u32 %s211_s12, 4  ;;  %s27_s16 = sshll.u32 %s257_s1, 4  ;;  %s17_s13 = int_to_ptr.vmem [resolvable:$true] %s16_s13  ;;  %s28_s16 = int_to_ptr.hbm [resolvable:$true] %s27_s16 }
   0x4   :  { %s212_s17 = smov 128   ;;  %s213_s18 = smov 8  }
   0x5   :  { %22 = dma.hbm_to_vmem [thread:$0]  %s15_s11, 256, %s17_s13, [#allocation4], %s212_s17, %s212_s17, %s213_s18  }
   0x6   :  { %s214_s19 = smov [#allocation6]  }
   0x7   :  { %s29_s20 = sshll.u32 %s214_s19, 4  ;;  %s30_s20 = int_to_ptr.vmem [resolvable:$true] %s29_s20 }
   0x8   :  { %35 = dma.hbm_to_vmem [thread:$0]  %s28_s16, 512, %s30_s20, [#allocation7], %s212_s17, %s212_s17, %s213_s18  }
   0x9   :  { %205 = dma.done.wait [#allocation4], 256  }
   0xa   :  { %206 = vsyncadd [#allocation4], 4294967040 }
   0xb   :  { %207 = dma.done.wait [#allocation7], 512  }
   0xc   :  { %208 = vsyncadd [#allocation7], 4294966784  ;;  %vm48_vm0 = vcmask 392192   ;;  %v215_v0 = vmov 0.0   ;;  %v58_v1 = vld [vmem:[#allocation6 + $0x18] sm:$0xff]  ;;  %v57_v2 = vld [vmem:[#allocation6 + $0x10] sm:$0xff] }
   0xd   :  { %49 = vst.msk [vmem:[#allocation2] sm:$0xff] %vm48_vm0, %v215_v0  ;;  %78 = vmatpush.msra.mxu0 %v58_v1  ;;  %123 = vmatpush.msra.mxu1 %v58_v1  ;;  %v56_v3 = vld [vmem:[#allocation6 + $0x8] sm:$0xff]  ;;  %v55_v4 = vld [vmem:[#allocation6] sm:$0xff]  ;;  %v53_v5 = vld [vmem:[#allocation3] sm:$0xff]  ;;  %vm59_vm1 = vcmask 261120   ;;  %s216_s0 = smov [#allocation8]  }
   0xe   :  { %50 = vst.msk [vmem:[#allocation2 + $0x8] sm:$0xff] %vm48_vm0, %v215_v0  ;;  %v54_v6 = vld [vmem:[#allocation3 + $0x8] sm:$0xff]  ;;  %s105_s1 = sshll.u32 %s216_s0, 4  ;;  %s107_s23 = sshll.u32 %s258_s2, 4  ;;  %s106_s1 = int_to_ptr.vmem [resolvable:$true] %s105_s1  ;;  %s108_s23 = int_to_ptr.hbm [resolvable:$true] %s107_s23 }
   0xf   :  { %79 = vmatpush.msra.mxu0 %v57_v2  ;;  %124 = vmatpush.msra.mxu1 %v57_v2 }
  0x11   :  { %80 = vmatpush.msra.mxu0 %v56_v3  ;;  %125 = vmatpush.msra.mxu1 %v56_v3 }
  0x13   :  { %81 = vmatpush.msra.mxu0 %v55_v4  ;;  %126 = vmatpush.msra.mxu1 %v55_v4 }
  0x14   :  { %121 = vmatmul.msk.f32.vlgmr.msra.gmra.mxu0 %vm59_vm1, %v53_v5  ;;  %122 = vmatmul.msk.f32.vlgmr.msra.gmra.mxu1 %vm59_vm1, %v54_v6  ;;  %v51_v7 = vld [vmem:[#allocation2] sm:$0xff] }
  0x15   :  { %v52_v8 = vld [vmem:[#allocation2 + $0x8] sm:$0xff] }
  0x91   :  { %v83_v9 = vpop.f32.mrf.mxu0  ;;  %v86_v10 = vpop.f32.mrf.mxu1 }
  0x92   :  { %v89_v11 = vadd.f32 %v83_v9, %v51_v7  ;;  %v90_v12 = vadd.f32 %v86_v10, %v52_v8 }
  0x94   :  { %92 = vst.msk [vmem:[#allocation2] sm:$0xff] %vm48_vm0, %v89_v11 }
  0x95   :  { %93 = vst.msk [vmem:[#allocation2 + $0x8] sm:$0xff] %vm48_vm0, %v90_v12 }
  0x9b   :  { %v97_v13 = vld [vmem:[#allocation2] sm:$0xff] }
  0x9c   :  { %v98_v14 = vld [vmem:[#allocation2 + $0x8] sm:$0xff]  ;;  %99 = vst.msk [vmem:[#allocation8] sm:$0xff] %vm48_vm0, %v97_v13 }
  0x9d   :  { %100 = vst.msk [vmem:[#allocation8 + $0x8] sm:$0xff] %vm48_vm0, %v98_v14 }
  0x9e   :  { %113 = dma.vmem_to_hbm [thread:$0]  %s106_s1, 256, %s108_s23, [#allocation5], %s212_s17, %s212_s17, %s213_s18  }
  0x9f   :  { %209 = dma.done.wait [#allocation5], 256  }
  0xa0   :  { %210 = vsyncadd [#allocation5], 4294967040 }
  0xa1   :  { %118 = vsyncpa [#allocation4], 1 }
  0xa2   :  { %119 = vsyncpa [#allocation7], 1 }
  0xa3   :  { %120 = vsyncpa [#allocation5], 1 }

</bundles_post_ra>
